<compile_context>
chip_gen: v7x
topology: tpu7x:2x2x1
jax: 0.10.0
libtpu: 0.0.40
codegen_flags: <defaults>
</compile_context>

<pallas_src>
import functools

import jax
import jax.numpy as jnp
from jax.experimental import pallas as pl
from jax.experimental.pallas import tpu as pltpu


def _loss_kernel(T, B, C, y_ref, mu_ref, ls2_ref, eps_ref, out_ref):
    # y_ref:   (B, 1)    int32  VMEM
    # mu_ref:  (B, C)    f32    VMEM
    # ls2_ref: (B, C)    f32    VMEM
    # eps_ref: (T, B, C) f32    VMEM
    # out_ref: (1, 1)    f32    VMEM
    mu = mu_ref[...]                               # (B, C)
    sigma = jnp.exp(0.5 * ls2_ref[...])            # (B, C)
    eps = eps_ref[...]                             # (T, B, C)

    # All T Monte-Carlo samples at once (batched MC axis, no serial carry).
    z = mu[None, :, :] + sigma[None, :, :] * eps   # (T, B, C)

    # log_softmax over the class dim (lanes) for every sample in one shot.
    m_c = jnp.max(z, axis=-1, keepdims=True)                               # (T, B, 1)
    lse_c = m_c + jnp.log(jnp.sum(jnp.exp(z - m_c), axis=-1, keepdims=True))
    logp = z - lse_c                               # (T, B, C), always finite, <= 0

    # logsumexp over the MC axis: logp <= 0 so exp(logp) in (0, 1] and the sum
    # is bounded by T — no running max / rescale needed.
    s = jnp.sum(jnp.exp(logp), axis=0)             # (B, C)
    lse_t = jnp.log(s)                             # logsumexp_t log_softmax(z_t)

    # nll gather: pick lse_t[i, y_i] via a where-select (robust, no one-hot).
    labels = y_ref[...]                            # (B, 1) int32
    col = jax.lax.broadcasted_iota(jnp.int32, (B, C), 1)
    picked = jnp.sum(jnp.where(col == labels, lse_t, 0.0))

    # loss = -mean_i (lse_t[i, y_i] - log T)  -> fold constants into the scalar
    loss = jnp.log(jnp.float32(T)) - picked / jnp.float32(B)
    out_ref[...] = jnp.full((1, 1), loss, dtype=jnp.float32)


def aleatoric_loss(mu, log_sigma2, y, *, key=None, eps=None, T=25):
    """mu, log_sigma2: (B, C) f32; y: (B,) int labels.

    Noise eps ~ N(0, 1) of shape (T, B, C) may be supplied directly (for
    verification) or is drawn from `key`.  Returns (scalar f32 loss, eps)."""
    B, C = mu.shape
    if eps is None:
        if key is None:
            key = jax.random.PRNGKey(0)
        eps = jax.random.normal(key, (T, B, C), dtype=jnp.float32)
    eps = eps.astype(jnp.float32)
    y2d = y.astype(jnp.int32).reshape(B, 1)

    kernel = functools.partial(_loss_kernel, T, B, C)
    cost = pl.CostEstimate(
        flops=10 * T * B * C,
        transcendentals=2 * T * B * C + 2 * B * C,
        bytes_accessed=(T * B * C + 2 * B * C + B + 1) * 4,
    )
    loss2d = pl.pallas_call(
        kernel,
        out_shape=jax.ShapeDtypeStruct((1, 1), jnp.float32),
        in_specs=[
            pl.BlockSpec(memory_space=pltpu.MemorySpace.VMEM),  # y (B,1)
            pl.BlockSpec(memory_space=pltpu.MemorySpace.VMEM),  # mu
            pl.BlockSpec(memory_space=pltpu.MemorySpace.VMEM),  # log_sigma2
            pl.BlockSpec(memory_space=pltpu.MemorySpace.VMEM),  # eps
        ],
        out_specs=pl.BlockSpec(memory_space=pltpu.MemorySpace.VMEM),
        cost_estimate=cost,
    )(y2d, mu.astype(jnp.float32), log_sigma2.astype(jnp.float32), eps)
    return loss2d[0, 0], eps


def _reference(mu, log_sigma2, y, eps, T):
    z = mu[None] + jnp.exp(0.5 * log_sigma2)[None] * eps            # (T,B,C)
    logp = jax.nn.log_softmax(z, axis=-1) - jnp.log(jnp.float32(T))
    log_avg = jax.scipy.special.logsumexp(logp, axis=0)             # (B,C)
    picked = jnp.take_along_axis(log_avg, y[:, None].astype(jnp.int32), axis=1)
    return -jnp.mean(picked)


if __name__ == "__main__":
    B, C, T = 8, 10, 25  # module defaults: class_count=10, T=25
    key = jax.random.PRNGKey(0)
    k_mu, k_ls2, k_y, k_eps = jax.random.split(key, 4)

    mu = jax.random.normal(k_mu, (B, C), dtype=jnp.float32)
    log_sigma2 = 0.1 * jax.random.normal(k_ls2, (B, C), dtype=jnp.float32)
    y = jax.random.randint(k_y, (B,), 0, C, dtype=jnp.int32)

    loss, eps = aleatoric_loss(mu, log_sigma2, y, key=k_eps, T=T)
    loss = jax.block_until_ready(loss)

    ref = _reference(mu, log_sigma2, y, eps, T)
    assert bool(jnp.isfinite(loss)), loss
    assert jnp.allclose(loss, ref, atol=1e-4, rtol=1e-4), (float(loss), float(ref))

    print("KERNEL_OK")
</pallas_src>

<mosaic_0001>
module attributes {stable_mosaic.version = 11 : i64} {
  func.func @_loss_kernel(%arg0: memref<8x1xi32, #tpu.memory_space<vmem>>, %arg1: memref<8x10xf32, #tpu.memory_space<vmem>>, %arg2: memref<8x10xf32, #tpu.memory_space<vmem>>, %arg3: memref<25x8x10xf32, #tpu.memory_space<vmem>>, %arg4: memref<1x1xf32, #tpu.memory_space<vmem>>) attributes {dimension_semantics = [], scalar_prefetch = 0 : i64, scratch_operands = 0 : i64, tpu.core_type = #tpu.core_type<tc>} {
    %c0 = arith.constant 0 : index
    %c0_0 = arith.constant 0 : index
    %0 = vector.load %arg1[%c0, %c0_0] : memref<8x10xf32, #tpu.memory_space<vmem>>, vector<8x10xf32>
    %c0_1 = arith.constant 0 : index
    %c0_2 = arith.constant 0 : index
    %1 = vector.load %arg2[%c0_1, %c0_2] : memref<8x10xf32, #tpu.memory_space<vmem>>, vector<8x10xf32>
    %cst = arith.constant 5.000000e-01 : f32
    %2 = vector.broadcast %cst : f32 to vector<8x10xf32>
    %3 = arith.mulf %2, %1 : vector<8x10xf32>
    %4 = math.exp %3 : vector<8x10xf32>
    %c0_3 = arith.constant 0 : index
    %c0_4 = arith.constant 0 : index
    %c0_5 = arith.constant 0 : index
    %5 = vector.load %arg3[%c0_3, %c0_4, %c0_5] : memref<25x8x10xf32, #tpu.memory_space<vmem>>, vector<25x8x10xf32>
    %6 = vector.shape_cast %0 : vector<8x10xf32> to vector<1x8x10xf32>
    %7 = vector.shape_cast %4 : vector<8x10xf32> to vector<1x8x10xf32>
    %8 = vector.broadcast %7 : vector<1x8x10xf32> to vector<25x8x10xf32>
    %9 = arith.mulf %8, %5 : vector<25x8x10xf32>
    %10 = vector.broadcast %6 : vector<1x8x10xf32> to vector<25x8x10xf32>
    %11 = arith.addf %10, %9 : vector<25x8x10xf32>
    %cst_6 = arith.constant dense<0xFF800000> : vector<25x8xf32>
    %12 = vector.multi_reduction <maximumf>, %11, %cst_6 [2] : vector<25x8x10xf32> to vector<25x8xf32>
    %13 = vector.shape_cast %12 : vector<25x8xf32> to vector<25x8x1xf32>
    %14 = vector.broadcast %13 : vector<25x8x1xf32> to vector<25x8x10xf32>
    %15 = arith.subf %11, %14 : vector<25x8x10xf32>
    %16 = math.exp %15 : vector<25x8x10xf32>
    %cst_7 = arith.constant dense<0.000000e+00> : vector<25x8xf32>
    %17 = vector.multi_reduction <add>, %16, %cst_7 [2] : vector<25x8x10xf32> to vector<25x8xf32>
    %18 = vector.shape_cast %17 : vector<25x8xf32> to vector<25x8x1xf32>
    %19 = math.log %18 : vector<25x8x1xf32>
    %20 = arith.addf %13, %19 : vector<25x8x1xf32>
    %21 = vector.broadcast %20 : vector<25x8x1xf32> to vector<25x8x10xf32>
    %22 = arith.subf %11, %21 : vector<25x8x10xf32>
    %23 = math.exp %22 : vector<25x8x10xf32>
    %cst_8 = arith.constant dense<0.000000e+00> : vector<8x10xf32>
    %24 = vector.multi_reduction <add>, %23, %cst_8 [0] : vector<25x8x10xf32> to vector<8x10xf32>
    %25 = math.log %24 : vector<8x10xf32>
    %c0_9 = arith.constant 0 : index
    %c0_10 = arith.constant 0 : index
    %26 = vector.load %arg0[%c0_9, %c0_10] : memref<8x1xi32, #tpu.memory_space<vmem>>, vector<8x1xi32>
    %27 = tpu.iota {dimensions = array<i32: 1>} : vector<8x10xi32>
    %28 = vector.broadcast %26 : vector<8x1xi32> to vector<8x10xi32>
    %29 = arith.cmpi eq, %27, %28 : vector<8x10xi32>
    %cst_11 = arith.constant 0.000000e+00 : f32
    %30 = vector.broadcast %cst_11 : f32 to vector<8x10xf32>
    %31 = arith.select %29, %25, %30 : vector<8x10xi1>, vector<8x10xf32>
    %32 = vector.shape_cast %31 : vector<8x10xf32> to vector<1x8x10xf32>
    %cst_12 = arith.constant dense<0.000000e+00> : vector<1xf32>
    %33 = vector.multi_reduction <add>, %32, %cst_12 [1, 2] : vector<1x8x10xf32> to vector<1xf32>
    %34 = vector.shape_cast %33 : vector<1xf32> to vector<1x1x1xf32>
    %35 = vector.extract %34[0, 0, 0] : f32 from vector<1x1x1xf32>
    %cst_13 = arith.constant 2.500000e+01 : f32
    %36 = math.log %cst_13 : f32
    %cst_14 = arith.constant 8.000000e+00 : f32
    %37 = arith.divf %35, %cst_14 : f32
    %38 = arith.subf %36, %37 : f32
    %39 = vector.broadcast %38 : f32 to vector<1x1xf32>
    %c0_15 = arith.constant 0 : index
    %c0_16 = arith.constant 0 : index
    %40 = vector.load %arg4[%c0_15, %c0_16] : memref<1x1xf32, #tpu.memory_space<vmem>>, vector<1x1xf32>
    tpu.vector_store %arg4[%c0_15, %c0_16], %39 {strides = array<i32>} : memref<1x1xf32, #tpu.memory_space<vmem>>, vector<1x1xf32>,
    return
  }
}

</mosaic_0001>

<bundles_post_ra>
// kernel: tpu_custom_call.1
= control target key start
LH: loop header
LB: loop body
LE: loop exit
PB: predicated region body
PF: predicated region fallthrough
CT: control target
= control target key end

     0   :  { %s1225_s0 = inlined_call_operand.vmem [shape: s32[8,1], index: 0, kind: input, shape index: {}]   ;;  %s1226_s1 = inlined_call_operand.vmem [shape: f32[8,10], index: 1, kind: input, shape index: {}]   ;;  %s1227_s2 = inlined_call_operand.vmem [shape: f32[8,10], index: 2, kind: input, shape index: {}]   ;;  %s1228_s3 = inlined_call_operand.vmem [shape: f32[25,8,10], index: 3, kind: input, shape index: {}]   ;;  %s1229_s4 = inlined_call_operand.hbm [shape: f32[1,1], index: 4, kind: output, shape index: {}]  }
   0x1   :  { %v19_v0 = vld [vmem:[%s1227_s2] sm:$0xff] }
   0x2   :  { %v20_v1 = vmul.f32 0.5, %v19_v0 }
   0x4   :  { %v21_v2 = vmul.f32 1.442695, %v20_v1 }
   0x6   :  { %569 = vpow2.f32 %v21_v2 }
   0x7   :  { %9 = vsyncpa [#allocation3], 0  ;;  %v23_v3 = vld [vmem:[%s1228_s3] sm:$0xff]  ;;  %v25_v4 = vld [vmem:[%s1228_s3 + $0x10] sm:$0xff]  ;;  %vm98_vm0 = vcmask 80896   ;;  %s748_s15 = smov [#allocation2]  }
   0x8   :  { %v24_v5 = vld [vmem:[%s1228_s3 + $0x8] sm:$0xff]  ;;  %v26_v6 = vld [vmem:[%s1228_s3 + $0x18] sm:$0xff]  ;;  %v27_v7 = vld [vmem:[%s1228_s3 + $0x20] sm:$0xff]  ;;  %s556_s16 = sshll.u32 %s748_s15, 4  ;;  %vm548_vm2 = vcmask 0   ;;  %s557_s16 = int_to_ptr.vmem [resolvable:$true] %s556_s16 }
   0x9   :  { %v28_v8 = vld [vmem:[%s1228_s3 + $0x28] sm:$0xff]  ;;  %v800_v10 = vld [vmem:[%s1226_s1] sm:$0xff]  ;;  %v29_v21 = vld [vmem:[%s1228_s3 + $0x30] sm:$0xff]  ;;  %s723_s18 = scalar_lea.vmem %s557_s16, 16  ;;  %s727_s19 = scalar_lea.vmem %s557_s16, 32 }
   0xa   :  { %v30_v22 = vld [vmem:[%s1228_s3 + $0x38] sm:$0xff]  ;;  %v31_v31 = vld [vmem:[%s1228_s3 + $0x40] sm:$0xff]  ;;  %v32_v32 = vld [vmem:[%s1228_s3 + $0x48] sm:$0xff]  ;;  %p724_p0 = scmp.ne.s32.totalorder %s557_s16, %s723_s18  ;;  %p728_p1 = scmp.lt.s32.totalorder %s557_s16, %s557_s16 }
   0xb   :  { %v33_v39 = vld [vmem:[%s1228_s3 + $0x50] sm:$0xff]  ;;  %v34_v40 = vld [vmem:[%s1228_s3 + $0x58] sm:$0xff]  ;;  %v35_v47 = vld [vmem:[%s1228_s3 + $0x60] sm:$0xff]  ;;  %p729_p2 = scmp.lt.s32.totalorder %s727_s19, %s723_s18 }
   0xc   :  { %v36_v48 = vld [vmem:[%s1228_s3 + $0x68] sm:$0xff]  ;;  %v37_v55 = vld [vmem:[%s1228_s3 + $0x70] sm:$0xff]  ;;  %v38_v56 = vld [vmem:[%s1228_s3 + $0x78] sm:$0xff] }
   0xd   :  { %v39_v63 = vld [vmem:[%s1228_s3 + $0x80] sm:$0xff]  ;;  %v40_v0 = vld [vmem:[%s1228_s3 + $0x88] sm:$0xff]  ;;  %p730_p3 = por %p729_p2, %p728_p1 }
   0xf   :  { %p731_p4 = pnand %p730_p3, %p724_p0 }
  0x10   :  { %v795_v9 = vpop.eup %569 }
  0x11   :  { %v48_v11 = vmul.f32 %v795_v9, %v23_v3  ;;  %v50_v12 = vmul.f32 %v795_v9, %v25_v4  ;;  %v49_v13 = vmul.f32 %v795_v9, %v24_v5  ;;  %v51_v14 = vmul.f32 %v795_v9, %v26_v6 }
  0x12   :  { %v52_v15 = vmul.f32 %v795_v9, %v27_v7  ;;  %v53_v16 = vmul.f32 %v795_v9, %v28_v8  ;;  %v54_v25 = vmul.f32 %v795_v9, %v29_v21  ;;  %v55_v26 = vmul.f32 %v795_v9, %v30_v22  ;;  %v41_v7 = vld [vmem:[%s1228_s3 + $0x90] sm:$0xff]  ;;  %v42_v8 = vld [vmem:[%s1228_s3 + $0x98] sm:$0xff]  ;;  %v43_v21 = vld [vmem:[%s1228_s3 + $0xa0] sm:$0xff] }
  0x13   :  { %v809_v17 = vadd.f32 %v48_v11, %v800_v10  ;;  %v812_v18 = vadd.f32 %v50_v12, %v800_v10  ;;  %v815_v19 = vadd.f32 %v49_v13, %v800_v10  ;;  %v818_v20 = vadd.f32 %v51_v14, %v800_v10  ;;  %v44_v22 = vld [vmem:[%s1228_s3 + $0xa8] sm:$0xff] }
  0x14   :  { %v837_v29 = vadd.f32 %v52_v15, %v800_v10  ;;  %v840_v30 = vadd.f32 %v53_v16, %v800_v10  ;;  %v849_v33 = vadd.f32 %v54_v25, %v800_v10  ;;  %v852_v34 = vadd.f32 %v55_v26, %v800_v10 }
  0x15   :  { %v99_v23 = vsel %vm98_vm0, %v809_v17, -inf  ;;  %v105_v24 = vsel %vm98_vm0, %v812_v18, -inf  ;;  %v102_v27 = vsel %vm98_vm0, %v815_v19, -inf  ;;  %v108_v28 = vsel %vm98_vm0, %v818_v20, -inf }
  0x16   :  { %100 = vmax.xlane.f32.xlu0 %v99_v23  ;;  %106 = vmax.xlane.f32.xlu1 %v105_v24  ;;  %v111_v35 = vsel %vm98_vm0, %v837_v29, -inf  ;;  %v114_v36 = vsel %vm98_vm0, %v840_v30, -inf  ;;  %v56_v37 = vmul.f32 %v795_v9, %v31_v31  ;;  %v57_v38 = vmul.f32 %v795_v9, %v32_v32  ;;  %v45_v31 = vld [vmem:[%s1228_s3 + $0xb0] sm:$0xff]  ;;  %v46_v32 = vld [vmem:[%s1228_s3 + $0xb8] sm:$0xff] }
  0x17   :  { %v117_v41 = vsel %vm98_vm0, %v849_v33, -inf  ;;  %v120_v42 = vsel %vm98_vm0, %v852_v34, -inf  ;;  %v58_v45 = vmul.f32 %v795_v9, %v33_v39  ;;  %v59_v46 = vmul.f32 %v795_v9, %v34_v40 }
  0x18   :  { %v871_v43 = vadd.f32 %v56_v37, %v800_v10  ;;  %v874_v44 = vadd.f32 %v57_v38, %v800_v10  ;;  %v60_v49 = vmul.f32 %v795_v9, %v35_v47  ;;  %v61_v50 = vmul.f32 %v795_v9, %v36_v48 }
  0x19   :  { %v891_v53 = vadd.f32 %v58_v45, %v800_v10  ;;  %v894_v54 = vadd.f32 %v59_v46, %v800_v10  ;;  %v62_v58 = vmul.f32 %v795_v9, %v37_v55  ;;  %v63_v62 = vmul.f32 %v795_v9, %v38_v56 }
  0x1a   :  { %103 = vmax.xlane.f32.xlu0 %v102_v27  ;;  %109 = vmax.xlane.f32.xlu1 %v108_v28  ;;  %v123_v51 = vsel %vm98_vm0, %v871_v43, -inf  ;;  %v126_v52 = vsel %vm98_vm0, %v874_v44, -inf  ;;  %v903_v57 = vadd.f32 %v60_v49, %v800_v10  ;;  %v911_v61 = vadd.f32 %v61_v50, %v800_v10 }
  0x1b   :  { %v129_v59 = vsel %vm98_vm0, %v891_v53, -inf  ;;  %v132_v60 = vsel %vm98_vm0, %v894_v54, -inf  ;;  %v923_v2 = vadd.f32 %v62_v58, %v800_v10  ;;  %v928_v4 = vadd.f32 %v63_v62, %v800_v10 }
  0x1c   :  { %v135_v1 = vsel %vm98_vm0, %v903_v57, -inf  ;;  %v138_v3 = vsel %vm98_vm0, %v911_v61, -inf  ;;  %v64_v5 = vmul.f32 %v795_v9, %v39_v63  ;;  %v65_v6 = vmul.f32 %v795_v9, %v40_v0 }
  0x1d   :  { %v141_v11 = vsel %vm98_vm0, %v923_v2, -inf  ;;  %v66_v12 = vmul.f32 %v795_v9, %v41_v7  ;;  %v144_v13 = vsel %vm98_vm0, %v928_v4, -inf  ;;  %v67_v16 = vmul.f32 %v795_v9, %v42_v8 }
  0x1e   :  { %112 = vmax.xlane.f32.xlu0 %v111_v35  ;;  %115 = vmax.xlane.f32.xlu1 %v114_v36  ;;  %v944_v14 = vadd.f32 %v64_v5, %v800_v10  ;;  %v947_v15 = vadd.f32 %v65_v6, %v800_v10  ;;  %v68_v23 = vmul.f32 %v795_v9, %v43_v21  ;;  %v747_v55 = vmov 0  }
  0x1f   :  { %v69_v24 = vmul.f32 %v795_v9, %v44_v22  ;;  %v963_v27 = vadd.f32 %v66_v12, %v800_v10  ;;  %v966_v28 = vadd.f32 %v67_v16, %v800_v10  ;;  %v70_v36 = vmul.f32 %v795_v9, %v45_v31  ;;  %568 = vset.pattern.permute.xlu0 %v747_v55 }
  0x20   :  { %v147_v25 = vsel %vm98_vm0, %v944_v14, -inf  ;;  %v150_v26 = vsel %vm98_vm0, %v947_v15, -inf  ;;  %v975_v35 = vadd.f32 %v68_v23, %v800_v10  ;;  %v71_v40 = vmul.f32 %v795_v9, %v46_v32 }
  0x21   :  { %v153_v37 = vsel %vm98_vm0, %v963_v27, -inf  ;;  %v156_v38 = vsel %vm98_vm0, %v966_v28, -inf  ;;  %v983_v39 = vadd.f32 %v69_v24, %v800_v10 }
  0x22   :  { %118 = vmax.xlane.f32.xlu0 %v117_v41  ;;  %121 = vmax.xlane.f32.xlu1 %v120_v42  ;;  %v47_v41 = vld [vmem:[%s1228_s3 + $0xc0] sm:$0xff]  ;;  %v990_v42 = vadd.f32 %v70_v36, %v800_v10  ;;  %v159_v45 = vsel %vm98_vm0, %v975_v35, -inf  ;;  %v997_v47 = vadd.f32 %v71_v40, %v800_v10 }
  0x23   :  { %v162_v46 = vsel %vm98_vm0, %v983_v39, -inf  ;;  %v72_v48 = vmul.f32 %v795_v9, %v47_v41 }
  0x24   :  { %1232 = vst [vmem:[#allocation5_spill] sm:$0xff] %v997_v47  ;;  %v165_v49 = vsel %vm98_vm0, %v990_v42, -inf  ;;  %v168_v50 = vsel %vm98_vm0, %v997_v47, -inf }
  0x26   :  { %124 = vmax.xlane.f32.xlu0 %v123_v51  ;;  %127 = vmax.xlane.f32.xlu1 %v126_v52  ;;  %v1005_v51 = vadd.f32 %v72_v48, %v800_v10 }
  0x28   :  { %1233 = vst [vmem:[#allocation6_spill] sm:$0xff] %v1005_v51  ;;  %v171_v52 = vsel %vm98_vm0, %v1005_v51, -inf }
  0x2a   :  { %130 = vmax.xlane.f32.xlu0 %v129_v59  ;;  %133 = vmax.xlane.f32.xlu1 %v132_v60 }
  0x2e   :  { %136 = vmax.xlane.f32.xlu0 %v135_v1  ;;  %139 = vmax.xlane.f32.xlu1 %v138_v3 }
  0x32   :  { %142 = vmax.xlane.f32.xlu0 %v141_v11  ;;  %145 = vmax.xlane.f32.xlu1 %v144_v13 }
  0x36   :  { %148 = vmax.xlane.f32.xlu0 %v147_v25  ;;  %151 = vmax.xlane.f32.xlu1 %v150_v26 }
  0x3a   :  { %154 = vmax.xlane.f32.xlu0 %v153_v37  ;;  %157 = vmax.xlane.f32.xlu1 %v156_v38 }
  0x3e   :  { %160 = vmax.xlane.f32.xlu0 %v159_v45  ;;  %163 = vmax.xlane.f32.xlu1 %v162_v46 }
  0x42   :  { %166 = vmax.xlane.f32.xlu0 %v165_v49  ;;  %169 = vmax.xlane.f32.xlu1 %v168_v50 }
  0x46   :  { %172 = vmax.xlane.f32.xlu0 %v171_v52 }
  0xa3   :  { %v1009_v9 = vpop.xlane.xlu0 %100  ;;  %v1011_v56 = vpop.xlane.xlu1 %106 }
  0xa4   :  { %v174_v58 = vsub.f32 %v809_v17, %v1009_v9  ;;  %v176_v59 = vsub.f32 %v812_v18, %v1011_v56 }
  0xa6   :  { %v199_v10 = vmul.f32 1.442695, %v174_v58  ;;  %v203_v60 = vmul.f32 1.442695, %v176_v59 }
  0xa7   :  { %v1017_v62 = vpop.xlane.xlu0 %103  ;;  %v1019_v63 = vpop.xlane.xlu1 %109 }
  0xa8   :  { %571 = vpow2.f32 %v199_v10  ;;  %v175_v0 = vsub.f32 %v815_v19, %v1017_v62  ;;  %v177_v1 = vsub.f32 %v818_v20, %v1019_v63 }
  0xa9   :  { %573 = vpow2.f32 %v203_v60 }
  0xaa   :  { %v201_v3 = vmul.f32 1.442695, %v175_v0  ;;  %v205_v5 = vmul.f32 1.442695, %v177_v1 }
  0xab   :  { %v1025_v6 = vpop.xlane.xlu0 %112  ;;  %v1027_v7 = vpop.xlane.xlu1 %115 }
  0xac   :  { %575 = vpow2.f32 %v201_v3  ;;  %v178_v8 = vsub.f32 %v837_v29, %v1025_v6  ;;  %v179_v11 = vsub.f32 %v840_v30, %v1027_v7 }
  0xad   :  { %577 = vpow2.f32 %v205_v5 }
  0xae   :  { %v207_v12 = vmul.f32 1.442695, %v178_v8  ;;  %v209_v13 = vmul.f32 1.442695, %v179_v11 }
  0xaf   :  { %v1033_v16 = vpop.xlane.xlu0 %118  ;;  %v1035_v21 = vpop.xlane.xlu1 %121 }
  0xb0   :  { %579 = vpow2.f32 %v207_v12  ;;  %v180_v22 = vsub.f32 %v849_v33, %v1033_v16  ;;  %v181_v23 = vsub.f32 %v852_v34, %v1035_v21 }
  0xb1   :  { %581 = vpow2.f32 %v209_v13 }
  0xb2   :  { %v572_v24 = vpop.eup %571  ;;  %v211_v25 = vmul.f32 1.442695, %v180_v22  ;;  %v213_v26 = vmul.f32 1.442695, %v181_v23 }
  0xb3   :  { %v574_v31 = vpop.eup %573  ;;  %v1041_v32 = vpop.xlane.xlu0 %124  ;;  %v249_v36 = vsel %vm98_vm0, %v572_v24, 0.0 }
  0xb4   :  { %v1044_v37 = vpop.xlane.xlu1 %127  ;;  %583 = vpow2.f32 %v211_v25  ;;  %v182_v38 = vsub.f32 %v871_v43, %v1041_v32  ;;  %250 = vadd.xlane.f32.xlu1 %v249_v36  ;;  %v255_v41 = vsel %vm98_vm0, %v574_v31, 0.0 }
  0xb5   :  { %v183_v40 = vsub.f32 %v874_v44, %v1044_v37  ;;  %585 = vpow2.f32 %v213_v26 }
  0xb6   :  { %v576_v45 = vpop.eup %575  ;;  %v215_v46 = vmul.f32 1.442695, %v182_v38 }
  0xb7   :  { %v217_v48 = vmul.f32 1.442695, %v183_v40  ;;  %v578_v49 = vpop.eup %577  ;;  %v1051_v50 = vpop.xlane.xlu0 %130  ;;  %v252_v52 = vsel %vm98_vm0, %v576_v45, 0.0 }
  0xb8   :  { %v1054_v55 = vpop.xlane.xlu1 %133  ;;  %587 = vpow2.f32 %v215_v46  ;;  %v184_v58 = vsub.f32 %v891_v53, %v1051_v50  ;;  %256 = vadd.xlane.f32.xlu1 %v255_v41  ;;  %253 = vadd.xlane.f32.xlu0 %v252_v52  ;;  %v258_v10 = vsel %vm98_vm0, %v578_v49, 0.0 }
  0xb9   :  { %v185_v59 = vsub.f32 %v894_v54, %v1054_v55  ;;  %589 = vpow2.f32 %v217_v48 }
  0xba   :  { %v580_v60 = vpop.eup %579  ;;  %v219_v0 = vmul.f32 1.442695, %v184_v58 }
  0xbb   :  { %v221_v1 = vmul.f32 1.442695, %v185_v59  ;;  %v582_v3 = vpop.eup %581  ;;  %v1061_v5 = vpop.xlane.xlu0 %136  ;;  %v261_v8 = vsel %vm98_vm0, %v580_v60, 0.0 }
  0xbc   :  { %v1064_v11 = vpop.xlane.xlu1 %139  ;;  %591 = vpow2.f32 %v219_v0  ;;  %v186_v12 = vsub.f32 %v903_v57, %v1061_v5  ;;  %259 = vadd.xlane.f32.xlu0 %v258_v10  ;;  %262 = vadd.xlane.f32.xlu1 %v261_v8  ;;  %v264_v22 = vsel %vm98_vm0, %v582_v3, 0.0 }
  0xbd   :  { %v187_v13 = vsub.f32 %v911_v61, %v1064_v11  ;;  %593 = vpow2.f32 %v221_v1 }
  0xbe   :  { %v584_v23 = vpop.eup %583  ;;  %v223_v24 = vmul.f32 1.442695, %v186_v12 }
  0xbf   :  { %v225_v25 = vmul.f32 1.442695, %v187_v13  ;;  %v586_v26 = vpop.eup %585  ;;  %v1071_v31 = vpop.xlane.xlu0 %142  ;;  %v267_v36 = vsel %vm98_vm0, %v584_v23, 0.0 }
  0xc0   :  { %v1074_v38 = vpop.xlane.xlu1 %145  ;;  %595 = vpow2.f32 %v223_v24  ;;  %v188_v40 = vsub.f32 %v923_v2, %v1071_v31  ;;  %265 = vadd.xlane.f32.xlu0 %v264_v22  ;;  %268 = vadd.xlane.f32.xlu1 %v267_v36  ;;  %v270_v45 = vsel %vm98_vm0, %v586_v26, 0.0 }
  0xc1   :  { %v189_v41 = vsub.f32 %v928_v4, %v1074_v38  ;;  %597 = vpow2.f32 %v225_v25 }
  0xc2   :  { %v588_v46 = vpop.eup %587  ;;  %v227_v48 = vmul.f32 1.442695, %v188_v40 }
  0xc3   :  { %v229_v49 = vmul.f32 1.442695, %v189_v41  ;;  %v590_v52 = vpop.eup %589  ;;  %v1081_v58 = vpop.xlane.xlu0 %148  ;;  %v273_v59 = vsel %vm98_vm0, %v588_v46, 0.0 }
  0xc4   :  { %v1084_v10 = vpop.xlane.xlu1 %151  ;;  %599 = vpow2.f32 %v227_v48  ;;  %v190_v60 = vsub.f32 %v944_v14, %v1081_v58  ;;  %271 = vadd.xlane.f32.xlu0 %v270_v45  ;;  %274 = vadd.xlane.f32.xlu1 %v273_v59  ;;  %v276_v1 = vsel %vm98_vm0, %v590_v52, 0.0 }
  0xc5   :  { %v191_v0 = vsub.f32 %v947_v15, %v1084_v10  ;;  %601 = vpow2.f32 %v229_v49 }
  0xc6   :  { %v592_v3 = vpop.eup %591  ;;  %v231_v8 = vmul.f32 1.442695, %v190_v60 }
  0xc7   :  { %v233_v12 = vmul.f32 1.442695, %v191_v0  ;;  %v594_v13 = vpop.eup %593  ;;  %v1091_v22 = vpop.xlane.xlu0 %154  ;;  %v279_v23 = vsel %vm98_vm0, %v592_v3, 0.0 }
  0xc8   :  { %v1094_v24 = vpop.xlane.xlu1 %157  ;;  %603 = vpow2.f32 %v231_v8  ;;  %v192_v25 = vsub.f32 %v963_v27, %v1091_v22  ;;  %277 = vadd.xlane.f32.xlu0 %v276_v1  ;;  %280 = vadd.xlane.f32.xlu1 %v279_v23  ;;  %v282_v36 = vsel %vm98_vm0, %v594_v13, 0.0 }
  0xc9   :  { %v193_v26 = vsub.f32 %v966_v28, %v1094_v24  ;;  %605 = vpow2.f32 %v233_v12 }
  0xca   :  { %v596_v40 = vpop.eup %595  ;;  %v235_v41 = vmul.f32 1.442695, %v192_v25 }
  0xcb   :  { %v237_v45 = vmul.f32 1.442695, %v193_v26  ;;  %v598_v46 = vpop.eup %597  ;;  %v1101_v48 = vpop.xlane.xlu0 %160  ;;  %v285_v49 = vsel %vm98_vm0, %v596_v40, 0.0 }
  0xcc   :  { %v1104_v52 = vpop.xlane.xlu1 %163  ;;  %607 = vpow2.f32 %v235_v41  ;;  %v194_v59 = vsub.f32 %v975_v35, %v1101_v48  ;;  %283 = vadd.xlane.f32.xlu0 %v282_v36  ;;  %286 = vadd.xlane.f32.xlu1 %v285_v49  ;;  %v288_v0 = vsel %vm98_vm0, %v598_v46, 0.0 }
  0xcd   :  { %v195_v60 = vsub.f32 %v983_v39, %v1104_v52  ;;  %609 = vpow2.f32 %v237_v45 }
  0xce   :  { %v600_v1 = vpop.eup %599  ;;  %v239_v3 = vmul.f32 1.442695, %v194_v59 }
  0xcf   :  { %v241_v8 = vmul.f32 1.442695, %v195_v60  ;;  %v602_v12 = vpop.eup %601  ;;  %v1111_v13 = vpop.xlane.xlu0 %166  ;;  %v291_v23 = vsel %vm98_vm0, %v600_v1, 0.0 }
  0xd0   :  { %v1114_v25 = vpop.xlane.xlu1 %169  ;;  %611 = vpow2.f32 %v239_v3  ;;  %v196_v26 = vsub.f32 %v990_v42, %v1111_v13  ;;  %289 = vadd.xlane.f32.xlu0 %v288_v0  ;;  %292 = vadd.xlane.f32.xlu1 %v291_v23  ;;  %v294_v40 = vsel %vm98_vm0, %v602_v12, 0.0 }
  0xd1   :  { %v197_v36 = vsub.f32 %v997_v47, %v1114_v25  ;;  %613 = vpow2.f32 %v241_v8 }
  0xd2   :  { %v604_v41 = vpop.eup %603  ;;  %v243_v45 = vmul.f32 1.442695, %v196_v26 }
  0xd3   :  { %v245_v46 = vmul.f32 1.442695, %v197_v36  ;;  %v606_v49 = vpop.eup %605  ;;  %v1121_v59 = vpop.xlane.xlu0 %172  ;;  %v297_v60 = vsel %vm98_vm0, %v604_v41, 0.0 }
  0xd4   :  { %615 = vpow2.f32 %v243_v45  ;;  %v198_v1 = vsub.f32 %v1005_v51, %v1121_v59  ;;  %295 = vadd.xlane.f32.xlu0 %v294_v40  ;;  %298 = vadd.xlane.f32.xlu1 %v297_v60  ;;  %v300_v0 = vsel %vm98_vm0, %v606_v49, 0.0 }
  0xd5   :  { %617 = vpow2.f32 %v245_v46 }
  0xd6   :  { %v608_v3 = vpop.eup %607  ;;  %v247_v8 = vmul.f32 1.442695, %v198_v1 }
  0xd7   :  { %v610_v12 = vpop.eup %609  ;;  %v303_v23 = vsel %vm98_vm0, %v608_v3, 0.0 }
  0xd8   :  { %619 = vpow2.f32 %v247_v8  ;;  %301 = vadd.xlane.f32.xlu0 %v300_v0  ;;  %304 = vadd.xlane.f32.xlu1 %v303_v23  ;;  %v306_v26 = vsel %vm98_vm0, %v610_v12, 0.0  ;;  %v525_v8 = vld [vmem:[%s1225_s0] sm:$0xff] }
  0xda   :  { %v612_v36 = vpop.eup %611 }
  0xdb   :  { %v614_v41 = vpop.eup %613  ;;  %v309_v45 = vsel %vm98_vm0, %v612_v36, 0.0 }
  0xdc   :  { %307 = vadd.xlane.f32.xlu0 %v306_v26  ;;  %310 = vadd.xlane.f32.xlu1 %v309_v45  ;;  %v312_v40 = vsel %vm98_vm0, %v614_v41, 0.0 }
  0xde   :  { %v616_v46 = vpop.eup %615 }
  0xdf   :  { %v618_v49 = vpop.eup %617  ;;  %v315_v60 = vsel %vm98_vm0, %v616_v46, 0.0 }
  0xe0   :  { %313 = vadd.xlane.f32.xlu0 %v312_v40  ;;  %316 = vadd.xlane.f32.xlu1 %v315_v60  ;;  %v318_v1 = vsel %vm98_vm0, %v618_v49, 0.0 }
  0xe2   :  { %v620_v0 = vpop.eup %619 }
  0xe3   :  { %v321_v3 = vsel %vm98_vm0, %v620_v0, 0.0 }
  0xe4   :  { %319 = vadd.xlane.f32.xlu0 %v318_v1  ;;  %322 = vadd.xlane.f32.xlu1 %v321_v3 }
  0xfa   :  { %529 = vperm.xlu0 %568, %v525_v8  }
 0x141   :  { %v251_v12 = vpop.xlane.xlu1 %250 }
 0x142   :  { %621 = vlog2.f32 %v251_v12 }
 0x145   :  { %v257_v23 = vpop.xlane.xlu1 %256  ;;  %v254_v26 = vpop.xlane.xlu0 %253 }
 0x146   :  { %623 = vlog2.f32 %v257_v23 }
 0x147   :  { %625 = vlog2.f32 %v254_v26 }
 0x149   :  { %v263_v36 = vpop.xlane.xlu1 %262  ;;  %v260_v41 = vpop.xlane.xlu0 %259 }
 0x14a   :  { %627 = vlog2.f32 %v263_v36 }
 0x14b   :  { %629 = vlog2.f32 %v260_v41 }
 0x14c   :  { %v622_v45 = vpop.eup %621 }
 0x14d   :  { %v325_v40 = vmul.f32 0.6931472, %v622_v45  ;;  %v269_v46 = vpop.xlane.xlu1 %268  ;;  %v266_v49 = vpop.xlane.xlu0 %265 }
 0x14e   :  { %631 = vlog2.f32 %v269_v46 }
 0x14f   :  { %v374_v60 = vadd.f32 %v325_v40, %v1009_v9  ;;  %633 = vlog2.f32 %v266_v49 }
 0x150   :  { %v624_v1 = vpop.eup %623 }
 0x151   :  { %v626_v0 = vpop.eup %625  ;;  %v399_v3 = vsub.f32 %v809_v17, %v374_v60  ;;  %v329_v8 = vmul.f32 0.6931472, %v624_v1  ;;  %v275_v12 = vpop.xlane.xlu1 %274 }
 0x152   :  { %v272_v23 = vpop.xlane.xlu0 %271  ;;  %v327_v26 = vmul.f32 0.6931472, %v626_v0  ;;  %635 = vlog2.f32 %v275_v12 }
 0x153   :  { %v376_v36 = vadd.f32 %v329_v8, %v1011_v56  ;;  %637 = vlog2.f32 %v272_v23  ;;  %v424_v45 = vmul.f32 1.442695, %v399_v3 }
 0x154   :  { %v628_v41 = vpop.eup %627  ;;  %v375_v47 = vadd.f32 %v327_v26, %v1017_v62 }
 0x155   :  { %v630_v46 = vpop.eup %629  ;;  %v401_v9 = vsub.f32 %v812_v18, %v376_v36  ;;  %v333_v40 = vmul.f32 0.6931472, %v628_v41  ;;  %v281_v49 = vpop.xlane.xlu1 %280 }
 0x156   :  { %v278_v51 = vpop.xlane.xlu0 %277  ;;  %v400_v17 = vsub.f32 %v815_v19, %v375_v47  ;;  %v331_v60 = vmul.f32 0.6931472, %v630_v46  ;;  %639 = vlog2.f32 %v281_v49 }
 0x157   :  { %v428_v1 = vmul.f32 1.442695, %v401_v9  ;;  %v378_v0 = vadd.f32 %v333_v40, %v1025_v6  ;;  %641 = vlog2.f32 %v278_v51 }
 0x158   :  { %v632_v56 = vpop.eup %631  ;;  %643 = vpow2.f32 %v424_v45  ;;  %v426_v8 = vmul.f32 1.442695, %v400_v17  ;;  %v377_v3 = vadd.f32 %v331_v60, %v1019_v63 }
 0x159   :  { %v634_v62 = vpop.eup %633  ;;  %645 = vpow2.f32 %v428_v1  ;;  %v403_v18 = vsub.f32 %v837_v29, %v378_v0  ;;  %v337_v12 = vmul.f32 0.6931472, %v632_v56  ;;  %v287_v23 = vpop.xlane.xlu1 %286 }
 0x15a   :  { %v284_v26 = vpop.xlane.xlu0 %283  ;;  %647 = vpow2.f32 %v426_v8  ;;  %v402_v19 = vsub.f32 %v818_v20, %v377_v3  ;;  %v335_v47 = vmul.f32 0.6931472, %v634_v62 }
 0x15b   :  { %v432_v36 = vmul.f32 1.442695, %v403_v18  ;;  %v380_v6 = vadd.f32 %v337_v12, %v1033_v16  ;;  %649 = vlog2.f32 %v287_v23 }
 0x15c   :  { %v636_v51 = vpop.eup %635  ;;  %v430_v41 = vmul.f32 1.442695, %v402_v19  ;;  %v379_v45 = vadd.f32 %v335_v47, %v1027_v7  ;;  %651 = vlog2.f32 %v284_v26 }
 0x15d   :  { %v638_v63 = vpop.eup %637  ;;  %653 = vpow2.f32 %v432_v36  ;;  %v405_v29 = vsub.f32 %v849_v33, %v380_v6  ;;  %v341_v46 = vmul.f32 0.6931472, %v636_v51  ;;  %v293_v9 = vpop.xlane.xlu1 %292 }
 0x15e   :  { %v290_v40 = vpop.xlane.xlu0 %289  ;;  %655 = vpow2.f32 %v430_v41  ;;  %v404_v20 = vsub.f32 %v840_v30, %v379_v45  ;;  %v339_v49 = vmul.f32 0.6931472, %v638_v63 }
 0x15f   :  { %v436_v17 = vmul.f32 1.442695, %v405_v29  ;;  %v382_v16 = vadd.f32 %v341_v46, %v1041_v32  ;;  %657 = vlog2.f32 %v293_v9 }
 0x160   :  { %v640_v60 = vpop.eup %639  ;;  %v434_v1 = vmul.f32 1.442695, %v404_v20  ;;  %v381_v7 = vadd.f32 %v339_v49, %v1035_v21  ;;  %659 = vlog2.f32 %v290_v40 }
 0x161   :  { %v642_v0 = vpop.eup %641  ;;  %661 = vpow2.f32 %v436_v17  ;;  %v407_v33 = vsub.f32 %v871_v43, %v382_v16  ;;  %v345_v56 = vmul.f32 0.6931472, %v640_v60  ;;  %v299_v8 = vpop.xlane.xlu1 %298 }
 0x162   :  { %v296_v3 = vpop.xlane.xlu0 %295  ;;  %v644_v62 = vpop.eup %643  ;;  %663 = vpow2.f32 %v434_v1  ;;  %v406_v30 = vsub.f32 %v852_v34, %v381_v7  ;;  %v343_v18 = vmul.f32 0.6931472, %v642_v0 }
 0x163   :  { %v646_v12 = vpop.eup %645  ;;  %v440_v32 = vmul.f32 1.442695, %v407_v33  ;;  %v384_v23 = vadd.f32 %v345_v56, %v1051_v50  ;;  %665 = vlog2.f32 %v299_v8  ;;  %v474_v43 = vsel %vm98_vm0, %v644_v62, 0.0 }
 0x164   :  { %v648_v26 = vpop.eup %647  ;;  %v438_v21 = vmul.f32 1.442695, %v406_v30  ;;  %v383_v19 = vadd.f32 %v343_v18, %v1044_v37  ;;  %667 = vlog2.f32 %v296_v3  ;;  %v477_v29 = vsel %vm98_vm0, %v646_v12, 0.0 }
 0x165   :  { %v650_v47 = vpop.eup %649  ;;  %v475_v36 = vsel %vm98_vm0, %v648_v26, 0.0  ;;  %669 = vpow2.f32 %v440_v32  ;;  %v409_v6 = vsub.f32 %v891_v53, %v384_v23  ;;  %v305_v34 = vpop.xlane.xlu1 %304 }
 0x166   :  { %v652_v51 = vpop.eup %651  ;;  %v476_v41 = vadd.f32 %v475_v36, %v474_v43  ;;  %671 = vpow2.f32 %v438_v21  ;;  %v408_v50 = vsub.f32 %v874_v44, %v383_v19  ;;  %v349_v45 = vmul.f32 0.6931472, %v650_v47  ;;  %v302_v9 = vpop.xlane.xlu0 %301 }
 0x167   :  { %v654_v63 = vpop.eup %653  ;;  %v444_v37 = vmul.f32 1.442695, %v409_v6  ;;  %v347_v46 = vmul.f32 0.6931472, %v652_v51  ;;  %673 = vlog2.f32 %v305_v34 }
 0x168   :  { %v656_v40 = vpop.eup %655  ;;  %v478_v20 = vadd.f32 %v477_v29, %v476_v41  ;;  %v442_v49 = vmul.f32 1.442695, %v408_v50  ;;  %v386_v17 = vadd.f32 %v349_v45, %v1061_v5  ;;  %v481_v8 = vsel %vm98_vm0, %v654_v63, 0.0 }
 0x169   :  { %v658_v53 = vpop.eup %657  ;;  %v479_v16 = vsel %vm98_vm0, %v656_v40, 0.0  ;;  %675 = vpow2.f32 %v444_v37  ;;  %v385_v60 = vadd.f32 %v347_v46, %v1054_v55  ;;  %v311_v33 = vpop.xlane.xlu1 %310 }
 0x16a   :  { %v660_v44 = vpop.eup %659  ;;  %v480_v1 = vadd.f32 %v479_v16, %v478_v20  ;;  %677 = vpow2.f32 %v442_v49  ;;  %v411_v7 = vsub.f32 %v903_v57, %v386_v17  ;;  %v353_v0 = vmul.f32 0.6931472, %v658_v53  ;;  %v308_v26 = vpop.xlane.xlu0 %307 }
 0x16b   :  { %v662_v56 = vpop.eup %661  ;;  %v410_v3 = vsub.f32 %v894_v54, %v385_v60  ;;  %v351_v62 = vmul.f32 0.6931472, %v660_v44  ;;  %679 = vlog2.f32 %v302_v9 }
 0x16c   :  { %v664_v5 = vpop.eup %663  ;;  %v482_v30 = vadd.f32 %v481_v8, %v480_v1  ;;  %v448_v18 = vmul.f32 1.442695, %v411_v7  ;;  %v388_v12 = vadd.f32 %v353_v0, %v1071_v31  ;;  %681 = vlog2.f32 %v311_v33 }
 0x16d   :  { %v666_v55 = vpop.eup %665  ;;  %v483_v32 = vsel %vm98_vm0, %v664_v5, 0.0  ;;  %v446_v23 = vmul.f32 1.442695, %v410_v3  ;;  %v387_v57 = vadd.f32 %v351_v62, %v1064_v11  ;;  %v485_v36 = vsel %vm98_vm0, %v662_v56, 0.0  ;;  %v317_v9 = vpop.xlane.xlu1 %316 }
 0x16e   :  { %v668_v21 = vpop.eup %667  ;;  %v484_v19 = vadd.f32 %v483_v32, %v482_v30  ;;  %683 = vpow2.f32 %v448_v18  ;;  %v413_v54 = vsub.f32 %v923_v2, %v388_v12  ;;  %v357_v47 = vmul.f32 0.6931472, %v666_v55 }
 0x16f   :  { %v670_v43 = vpop.eup %669  ;;  %685 = vpow2.f32 %v446_v23  ;;  %v412_v31 = vsub.f32 %v911_v61, %v387_v57  ;;  %v355_v6 = vmul.f32 0.6931472, %v668_v21 }
 0x170   :  { %v672_v34 = vpop.eup %671  ;;  %v486_v51 = vadd.f32 %v485_v36, %v484_v19  ;;  %v452_v41 = vmul.f32 1.442695, %v413_v54  ;;  %v390_v11 = vadd.f32 %v357_v47, %v1081_v58  ;;  %687 = vlog2.f32 %v308_v26  ;;  %v314_v58 = vpop.xlane.xlu0 %313 }
 0x171   :  { %v674_v50 = vpop.eup %673  ;;  %v487_v45 = vsel %vm98_vm0, %v672_v34, 0.0  ;;  %v450_v63 = vmul.f32 1.442695, %v412_v31  ;;  %v389_v29 = vadd.f32 %v355_v6, %v1074_v38  ;;  %v489_v40 = vsel %vm98_vm0, %v670_v43, 0.0 }
 0x172   :  { %v488_v2 = vadd.f32 %v487_v45, %v486_v51  ;;  %689 = vpow2.f32 %v452_v41  ;;  %v415_v37 = vsub.f32 %v944_v14, %v390_v11  ;;  %v361_v46 = vmul.f32 0.6931472, %v674_v50 }
 0x173   :  { %v676_v61 = vpop.eup %675  ;;  %691 = vpow2.f32 %v450_v63  ;;  %v414_v20 = vsub.f32 %v928_v4, %v389_v29 }
 0x174   :  { %v678_v49 = vpop.eup %677  ;;  %v490_v17 = vadd.f32 %v489_v40, %v488_v2  ;;  %v456_v53 = vmul.f32 1.442695, %v415_v37  ;;  %v392_v16 = vadd.f32 %v361_v46, %v1091_v22  ;;  %693 = vlog2.f32 %v317_v9  ;;  %v323_v22 = vpop.xlane.xlu1 %322 }
 0x175   :  { %v680_v38 = vpop.eup %679  ;;  %v491_v60 = vsel %vm98_vm0, %v678_v49, 0.0  ;;  %v454_v44 = vmul.f32 1.442695, %v414_v20  ;;  %v493_v33 = vsel %vm98_vm0, %v676_v61, 0.0  ;;  %v320_v30 = vpop.xlane.xlu0 %319 }
 0x176   :  { %v492_v14 = vadd.f32 %v491_v60, %v490_v17  ;;  %v417_v1 = vsub.f32 %v963_v27, %v392_v16  ;;  %v359_v7 = vmul.f32 0.6931472, %v680_v38  ;;  %v682_v0 = vpop.eup %681 }
 0x177   :  { %695 = vpow2.f32 %v454_v44  ;;  %v365_v3 = vmul.f32 0.6931472, %v682_v0  ;;  %v1234_v44 = vld [vmem:[#allocation6_spill] sm:$0xff] }
 0x178   :  { %v684_v4 = vpop.eup %683  ;;  %v494_v56 = vadd.f32 %v493_v33, %v492_v14  ;;  %697 = vpow2.f32 %v456_v53  ;;  %v391_v8 = vadd.f32 %v359_v7, %v1084_v10  ;;  %v460_v5 = vmul.f32 1.442695, %v417_v1 }
 0x179   :  { %v686_v62 = vpop.eup %685  ;;  %699 = vlog2.f32 %v314_v58  ;;  %v394_v12 = vadd.f32 %v365_v3, %v1101_v48  ;;  %v497_v57 = vsel %vm98_vm0, %v684_v4, 0.0 }
 0x17a   :  { %v495_v18 = vsel %vm98_vm0, %v686_v62, 0.0  ;;  %v416_v27 = vsub.f32 %v947_v15, %v391_v8  ;;  %v688_v55 = vpop.eup %687  ;;  %701 = vlog2.f32 %v323_v22 }
 0x17b   :  { %v496_v32 = vadd.f32 %v495_v18, %v494_v56  ;;  %v363_v10 = vmul.f32 0.6931472, %v688_v55  ;;  %703 = vlog2.f32 %v320_v30  ;;  %v419_v47 = vsub.f32 %v975_v35, %v394_v12 }
 0x17c   :  { %v690_v23 = vpop.eup %689  ;;  %v458_v26 = vmul.f32 1.442695, %v416_v27  ;;  %705 = vpow2.f32 %v460_v5 }
 0x17d   :  { %v692_v21 = vpop.eup %691  ;;  %v498_v19 = vadd.f32 %v497_v57, %v496_v32  ;;  %v393_v15 = vadd.f32 %v363_v10, %v1094_v24  ;;  %v501_v36 = vsel %vm98_vm0, %v690_v23, 0.0  ;;  %v464_v50 = vmul.f32 1.442695, %v419_v47 }
 0x17e   :  { %v499_v54 = vsel %vm98_vm0, %v692_v21, 0.0  ;;  %707 = vpow2.f32 %v458_v26  ;;  %v694_v48 = vpop.eup %693  ;;  %v526_v10 = vlaneseq }
 0x17f   :  { %v500_v43 = vadd.f32 %v499_v54, %v498_v19  ;;  %v418_v31 = vsub.f32 %v966_v28, %v393_v15  ;;  %v369_v6 = vmul.f32 0.6931472, %v694_v48  ;;  %v530_v19 = vpop.permute.xlu0 %529 }
 0x180   :  { %v527_v21 = vand.u32 127, %v526_v10 }
 0x181   :  { %v696_v34 = vpop.eup %695  ;;  %v502_v51 = vadd.f32 %v501_v36, %v500_v43  ;;  %v462_v45 = vmul.f32 1.442695, %v418_v31  ;;  %v396_v63 = vadd.f32 %v369_v6, %v1111_v13 }
 0x182   :  { %v698_v41 = vpop.eup %697  ;;  %v503_v11 = vsel %vm98_vm0, %v696_v34, 0.0  ;;  %vm531_vm1 = vcmp.eq.s32.totalorder %v527_v21, %v530_v19 }
 0x183   :  { %v700_v29 = vpop.eup %699  ;;  %v504_v35 = vadd.f32 %v503_v11, %v502_v51  ;;  %709 = vpow2.f32 %v462_v45  ;;  %v421_v24 = vsub.f32 %v990_v42, %v396_v63  ;;  %v505_v46 = vsel %vm98_vm0, %v698_v41, 0.0 }
 0x184   :  { %v367_v2 = vmul.f32 0.6931472, %v700_v29  ;;  %v702_v37 = vpop.eup %701  ;;  %711 = vpow2.f32 %v464_v50 }
 0x185   :  { %v704_v28 = vpop.eup %703  ;;  %v506_v9 = vadd.f32 %v505_v46, %v504_v35  ;;  %v373_v40 = vmul.f32 0.6931472, %v702_v37  ;;  %v468_v58 = vmul.f32 1.442695, %v421_v24 }
 0x186   :  { %v395_v61 = vadd.f32 %v367_v2, %v1104_v52  ;;  %v706_v20 = vpop.eup %705  ;;  %v371_v49 = vmul.f32 0.6931472, %v704_v28  ;;  %v1235_v52 = vld [vmem:[#allocation5_spill] sm:$0xff] }
 0x187   :  { %v398_v53 = vadd.f32 %v373_v40, %v1121_v59  ;;  %v509_v1 = vsel %vm98_vm0, %v706_v20, 0.0  ;;  %713 = vpow2.f32 %v468_v58 }
 0x188   :  { %v708_v17 = vpop.eup %707  ;;  %v420_v13 = vsub.f32 %v983_v39, %v395_v61  ;;  %v397_v16 = vadd.f32 %v371_v49, %v1114_v25 }
 0x189   :  { %v507_v42 = vsel %vm98_vm0, %v708_v17, 0.0  ;;  %v423_v14 = vsub.f32 %v1234_v44, %v398_v53 }
 0x18a   :  { %v508_v38 = vadd.f32 %v507_v42, %v506_v9  ;;  %v466_v60 = vmul.f32 1.442695, %v420_v13  ;;  %v422_v7 = vsub.f32 %v1235_v52, %v397_v16 }
 0x18b   :  { %v472_v0 = vmul.f32 1.442695, %v423_v14 }
 0x18c   :  { %715 = vpow2.f32 %v466_v60  ;;  %v510_v33 = vadd.f32 %v509_v1, %v508_v38  ;;  %v470_v4 = vmul.f32 1.442695, %v422_v7 }
 0x18d   :  { %v710_v39 = vpop.eup %709 }
 0x18e   :  { %717 = vpow2.f32 %v470_v4  ;;  %v511_v59 = vsel %vm98_vm0, %v710_v39, 0.0  ;;  %v712_v56 = vpop.eup %711 }
 0x18f   :  { %719 = vpow2.f32 %v472_v0  ;;  %v512_v25 = vadd.f32 %v511_v59, %v510_v33  ;;  %v513_v8 = vsel %vm98_vm0, %v712_v56, 0.0 }
 0x191   :  { %v514_v3 = vadd.f32 %v513_v8, %v512_v25  ;;  %v714_v22 = vpop.eup %713 }
 0x192   :  { %v517_v27 = vsel %vm98_vm0, %v714_v22, 0.0 }
 0x196   :  { %v716_v62 = vpop.eup %715 }
 0x197   :  { %v515_v5 = vsel %vm98_vm0, %v716_v62, 0.0 }
 0x198   :  { %v516_v30 = vadd.f32 %v515_v5, %v514_v3  ;;  %v718_v18 = vpop.eup %717 }
 0x199   :  { %v720_v12 = vpop.eup %719  ;;  %v519_v32 = vsel %vm98_vm0, %v718_v18, 0.0 }
 0x19a   :  { %v518_v55 = vadd.f32 %v517_v27, %v516_v30  ;;  %v521_v57 = vsel %vm98_vm0, %v720_v12, 0.0 }
 0x19c   :  { %v520_v23 = vadd.f32 %v519_v32, %v518_v55 }
 0x19e   :  { %v522_v26 = vadd.f32 %v521_v57, %v520_v23 }
 0x1a0   :  { %721 = vlog2.f32 %v522_v26 }
 0x1aa   :  { %v722_v54 = vpop.eup %721 }
 0x1ab   :  { %v524_v47 = vmul.f32 0.6931472, %v722_v54 }
 0x1ad   :  { %v532_v15 = vsel %vm531_vm1, %v524_v47, 0.0 }
 0x1ae   :  { %v533_v48 = vsel %vm98_vm0, %v532_v15, 0.0 }
 0x1af   :  { %534 = vadd.xlane.f32.xlu1 %v533_v48 }
 0x23c   :  { %v535_v43 = vpop.xlane.xlu1 %534 }
 0x23d   :  { %v536_v36 = vrot.slane %v535_v43, 4 }
 0x23f   :  { %v537_v31 = vadd.f32 %v536_v36, %v535_v43 }
 0x241   :  { %v538_v6 = vrot.slane %v537_v31, 2 }
 0x243   :  { %v539_v34 = vadd.f32 %v538_v6, %v537_v31 }
 0x245   :  { %v540_v51 = vrot.slane %v539_v34, 1 }
 0x247   :  { %v541_v41 = vadd.f32 %v540_v51, %v539_v34 }
 0x249   :  { %564 = vpush %v541_v41 }
 0x27a   :  { %s565_s0 = spop %564 }
 0x27b   :  { %s545_s14 = smul.f32 0.125, %s565_s0 }
 0x27d   :  { %s546_s17 = ssub.f32 3.218876, %s545_s14 }
 0x27f   :  { %v547_v11 = vstv %s546_s17 }
 0x280   :  { %549 = vst.msk [vmem:[#allocation2] sm:$0x1] %vm548_vm2, %v547_v11 }
 0x281   :  { %734 = shalt.err (!%p731_p4)
}
 0x282   :  { %s735_s22 = scalar_lea.hbm %s1229_s4, 16 }
 0x283   :  { %p736_p5 = scmp.ne.s32.totalorder %s1229_s4, %s735_s22  ;;  %p739_p6 = scmp.lt.u32.totalorder %s735_s22, %s1229_s4 }
 0x285   :  { %p741_p7 = pnand %p739_p6, %p736_p5 }
 0x287   :  { %744 = shalt.err (!%p741_p7)
}
 0x288   :  { %559 = dma.vmem_to_hbm [thread:$0]  %s557_s16, 16, %s1229_s4, [#allocation3]  }
 0x289   :  { %745 = dma.done.wait [#allocation3], 16  }
 0x28a   :  { %746 = vsyncadd [#allocation3], 4294967280 }
 0x28b   :  { %563 = vsyncpa [#allocation3], 1 }

</bundles_post_ra>
